<compile_context>
chip_gen: v7x
topology: tpu7x:2x2x1
jax: 0.10.0
libtpu: 0.0.40
codegen_flags: <defaults>
</compile_context>

<pallas_src>
import jax
import jax.numpy as jnp
from jax.experimental import pallas as pl
from jax.experimental.pallas import tpu as pltpu

SUBLANE = 8


def _round_up(n, m):
    return ((n + m - 1) // m) * m


def qnetwork_kernel(x_ref, w1_ref, b1_ref, w2_ref, b2_ref, w3_ref, b3_ref, o_ref):
    # x: (TB, S) f32   w1: (S, H1) bf16   w2: (H1, H2) bf16   w3: (H2, A_pad) bf16
    # biases: f32 (added to the f32 MXU accumulator)
    x = x_ref[...].astype(w1_ref.dtype)  # cast in-kernel; VPU slack makes this free

    # fc1 + ReLU  (bf16 MXU matmul, f32 accumulation)
    h1 = jnp.dot(x, w1_ref[...], preferred_element_type=jnp.float32) + b1_ref[...]
    h1 = jnp.maximum(h1, 0.0)

    # fc2 + ReLU
    h2 = jnp.dot(h1.astype(w2_ref.dtype), w2_ref[...],
                 preferred_element_type=jnp.float32) + b2_ref[...]
    h2 = jnp.maximum(h2, 0.0)

    # fc3 (no activation) — narrow (TB, A_pad) store, A_pad = round_up(A, 8)
    out = jnp.dot(h2.astype(w3_ref.dtype), w3_ref[...],
                  preferred_element_type=jnp.float32) + b3_ref[...]
    o_ref[...] = out.astype(o_ref.dtype)


def prepare_params(params, compute_dtype=jnp.bfloat16):
    """Cast weights to bf16 and pad the final layer to a small sublane-aligned width."""
    w3 = params["w3"]
    b3 = params["b3"]
    A = w3.shape[1]
    A_pad = _round_up(A, SUBLANE)
    w3p = jnp.zeros((w3.shape[0], A_pad), compute_dtype).at[:, :A].set(
        w3.astype(compute_dtype))
    b3p = jnp.zeros((1, A_pad), jnp.float32).at[:, :A].set(b3.astype(jnp.float32))
    return {
        "w1": params["w1"].astype(compute_dtype),
        "b1": params["b1"].astype(jnp.float32),
        "w2": params["w2"].astype(compute_dtype),
        "b2": params["b2"].astype(jnp.float32),
        "w3p": w3p,
        "b3p": b3p,
    }


def qnetwork_forward(x, prepared, action_size, tile_b=8192):
    """Fused 3-layer MLP, batch-tiled over a 1-D 'parallel' grid.

    x: (B, state_size) float32
    prepared: output of prepare_params
    returns: (B, action_size) float32
    """
    B, S = x.shape
    w1, b1 = prepared["w1"], prepared["b1"]
    w2, b2 = prepared["w2"], prepared["b2"]
    w3p, b3p = prepared["w3p"], prepared["b3p"]
    H1 = w1.shape[1]
    H2 = w2.shape[1]
    A_pad = w3p.shape[1]

    # Batch tile: multiple of 8 (sublane), capped by the (8-rounded) batch.
    B8 = _round_up(B, SUBLANE)
    tb = min(_round_up(tile_b, SUBLANE), B8)
    # Keep >= 2 grid steps when the batch is big enough, so the 'parallel' axis can
    # shard across both v7x TensorCores (each step stays large enough to amortize
    # the ~0.35 us per-step overhead).
    if B8 >= 512:
        tb = min(tb, _round_up(pl.cdiv(B8, 2), SUBLANE))
    B_pad = _round_up(B8, tb)

    x_p = x
    if B_pad != B:
        # Only pad when the batch doesn't divide the tile; no dtype-cast pass over x.
        x_p = jnp.pad(x, ((0, B_pad - B), (0, 0)))

    grid = (B_pad // tb,)

    flops = 2 * B_pad * (S * H1 + H1 * H2 + H2 * A_pad)
    bytes_accessed = (B_pad * S * 4                              # x (f32)
                      + B_pad * A_pad * 4                        # out (f32)
                      + (S * H1 + H1 * H2 + H2 * A_pad) * 2      # bf16 weights
                      + (H1 + H2 + A_pad) * 4)                   # f32 biases
    cost = pl.CostEstimate(flops=flops, transcendentals=0,
                           bytes_accessed=bytes_accessed)

    out = pl.pallas_call(
        qnetwork_kernel,
        out_shape=jax.ShapeDtypeStruct((B_pad, A_pad), jnp.float32),
        grid=grid,
        in_specs=[
            pl.BlockSpec((tb, S), lambda i: (i, 0)),          # x: tiled over batch (f32)
            pl.BlockSpec(w1.shape, lambda i: (0, 0)),         # weights/biases resident
            pl.BlockSpec(b1.shape, lambda i: (0, 0)),
            pl.BlockSpec(w2.shape, lambda i: (0, 0)),
            pl.BlockSpec(b2.shape, lambda i: (0, 0)),
            pl.BlockSpec(w3p.shape, lambda i: (0, 0)),
            pl.BlockSpec(b3p.shape, lambda i: (0, 0)),
        ],
        out_specs=pl.BlockSpec((tb, A_pad), lambda i: (i, 0)),
        compiler_params=pltpu.CompilerParams(
            dimension_semantics=("parallel",),
            vmem_limit_bytes=32 * 1024 * 1024),
        cost_estimate=cost,
    )(x_p, w1, b1, w2, b2, w3p, b3p)

    return out[:B, :action_size]


def init_qnetwork_params(key, state_size, action_size, fc1_units=64, fc2_units=64):
    """Deterministic init mirroring torch.nn.Linear default (uniform +/- 1/sqrt(fan_in))."""
    def linear(k, fan_in, fan_out):
        kw, kb = jax.random.split(k)
        bound = 1.0 / jnp.sqrt(jnp.float32(fan_in))
        w = jax.random.uniform(kw, (fan_in, fan_out), jnp.float32, -bound, bound)
        b = jax.random.uniform(kb, (1, fan_out), jnp.float32, -bound, bound)
        return w, b

    k1, k2, k3 = jax.random.split(key, 3)
    w1, b1 = linear(k1, state_size, fc1_units)
    w2, b2 = linear(k2, fc1_units, fc2_units)
    w3, b3 = linear(k3, fc2_units, action_size)
    return {"w1": w1, "b1": b1, "w2": w2, "b2": b2, "w3": w3, "b3": b3}


def qnetwork_ref_f32(x, p):
    """Pure-f32 JAX reference (matches the torch module exactly)."""
    h1 = jnp.maximum(x @ p["w1"] + p["b1"], 0.0)
    h2 = jnp.maximum(h1 @ p["w2"] + p["b2"], 0.0)
    return h2 @ p["w3"] + p["b3"]


def qnetwork_ref_bf16(x, p):
    """Reference mimicking the kernel's bf16 inputs / f32 accumulation."""
    bf = jnp.bfloat16
    h1 = jnp.dot(x.astype(bf), p["w1"].astype(bf),
                 preferred_element_type=jnp.float32) + p["b1"]
    h1 = jnp.maximum(h1, 0.0)
    h2 = jnp.dot(h1.astype(bf), p["w2"].astype(bf),
                 preferred_element_type=jnp.float32) + p["b2"]
    h2 = jnp.maximum(h2, 0.0)
    return jnp.dot(h2.astype(bf), p["w3"].astype(bf),
                   preferred_element_type=jnp.float32) + p["b3"]


if __name__ == "__main__":
    key = jax.random.PRNGKey(0)
    k_params, k_x = jax.random.split(key)

    state_size, action_size = 8, 4
    batch = 8

    params = init_qnetwork_params(k_params, state_size, action_size,
                                  fc1_units=64, fc2_units=64)
    prepared = prepare_params(params)
    x = jax.random.normal(k_x, (batch, state_size), jnp.float32)

    out = qnetwork_forward(x, prepared, action_size)
    out = jax.block_until_ready(out)
    assert out.shape == (batch, action_size)

    # Tight check vs a reference that mimics the kernel's bf16/f32 numerics.
    ref_bf16 = qnetwork_ref_bf16(x, params)
    assert jnp.allclose(out, ref_bf16, atol=1e-3, rtol=1e-3), \
        "mismatch vs bf16-accumulation reference"

    # Looser check vs the exact f32 torch-equivalent reference (bf16 weight rounding).
    ref_f32 = qnetwork_ref_f32(x, params)
    assert jnp.allclose(out, ref_f32, atol=5e-2, rtol=5e-2), \
        "mismatch vs f32 reference"

    print("KERNEL_OK")
</pallas_src>

<mosaic_0001>
module attributes {stable_mosaic.version = 11 : i64} {
  func.func @qnetwork_kernel(%arg0: i32, %arg1: memref<8x8xf32, #tpu.memory_space<vmem>>, %arg2: memref<8x64xbf16, #tpu.memory_space<vmem>>, %arg3: memref<1x64xf32, #tpu.memory_space<vmem>>, %arg4: memref<64x64xbf16, #tpu.memory_space<vmem>>, %arg5: memref<1x64xf32, #tpu.memory_space<vmem>>, %arg6: memref<64x8xbf16, #tpu.memory_space<vmem>>, %arg7: memref<1x8xf32, #tpu.memory_space<vmem>>, %arg8: memref<8x8xf32, #tpu.memory_space<vmem>>) attributes {dimension_semantics = [#tpu.dimension_semantics<parallel>], iteration_bounds = array<i64: 1>, scalar_prefetch = 0 : i64, scratch_operands = 0 : i64, tpu.core_type = #tpu.core_type<tc>, window_params = [{transform_indices = @transform_0, window_bounds = array<i64: 8, 8>}, {pipeline_mode = #tpu.pipeline_mode<synchronous>, transform_indices = @transform_1, window_bounds = array<i64: 8, 64>}, {pipeline_mode = #tpu.pipeline_mode<synchronous>, transform_indices = @transform_2, window_bounds = array<i64: 1, 64>}, {pipeline_mode = #tpu.pipeline_mode<synchronous>, transform_indices = @transform_3, window_bounds = array<i64: 64, 64>}, {pipeline_mode = #tpu.pipeline_mode<synchronous>, transform_indices = @transform_4, window_bounds = array<i64: 1, 64>}, {pipeline_mode = #tpu.pipeline_mode<synchronous>, transform_indices = @transform_5, window_bounds = array<i64: 64, 8>}, {pipeline_mode = #tpu.pipeline_mode<synchronous>, transform_indices = @transform_6, window_bounds = array<i64: 1, 8>}, {transform_indices = @transform_7, window_bounds = array<i64: 8, 8>}]} {
    %c0 = arith.constant 0 : index
    %c0_0 = arith.constant 0 : index
    %0 = vector.load %arg1[%c0, %c0_0] : memref<8x8xf32, #tpu.memory_space<vmem>>, vector<8x8xf32>
    %1 = arith.truncf %0 : vector<8x8xf32> to vector<8x8xbf16>
    %c0_1 = arith.constant 0 : index
    %c0_2 = arith.constant 0 : index
    %2 = vector.load %arg2[%c0_1, %c0_2] : memref<8x64xbf16, #tpu.memory_space<vmem>>, vector<8x64xbf16>
    %cst = arith.constant dense<0.000000e+00> : vector<8x64xf32>
    %3 = tpu.matmul %1, %2, %cst {dimension_numbers = #tpu.dot_dimension_numbers<[1], [0], [0], [1], [0, 0, 1, 1], [], []>} : vector<8x8xbf16>, vector<8x64xbf16>, vector<8x64xf32> -> vector<8x64xf32>
    %c0_3 = arith.constant 0 : index
    %c0_4 = arith.constant 0 : index
    %4 = vector.load %arg3[%c0_3, %c0_4] : memref<1x64xf32, #tpu.memory_space<vmem>>, vector<1x64xf32>
    %5 = vector.broadcast %4 : vector<1x64xf32> to vector<8x64xf32>
    %6 = arith.addf %3, %5 : vector<8x64xf32>
    %cst_5 = arith.constant 0.000000e+00 : f32
    %7 = vector.broadcast %cst_5 : f32 to vector<8x64xf32>
    %8 = arith.maximumf %6, %7 : vector<8x64xf32>
    %9 = arith.truncf %8 : vector<8x64xf32> to vector<8x64xbf16>
    %c0_6 = arith.constant 0 : index
    %c0_7 = arith.constant 0 : index
    %10 = vector.load %arg4[%c0_6, %c0_7] : memref<64x64xbf16, #tpu.memory_space<vmem>>, vector<64x64xbf16>
    %cst_8 = arith.constant dense<0.000000e+00> : vector<8x64xf32>
    %11 = tpu.matmul %9, %10, %cst_8 {dimension_numbers = #tpu.dot_dimension_numbers<[1], [0], [0], [1], [0, 0, 1, 1], [], []>} : vector<8x64xbf16>, vector<64x64xbf16>, vector<8x64xf32> -> vector<8x64xf32>
    %c0_9 = arith.constant 0 : index
    %c0_10 = arith.constant 0 : index
    %12 = vector.load %arg5[%c0_9, %c0_10] : memref<1x64xf32, #tpu.memory_space<vmem>>, vector<1x64xf32>
    %13 = vector.broadcast %12 : vector<1x64xf32> to vector<8x64xf32>
    %14 = arith.addf %11, %13 : vector<8x64xf32>
    %cst_11 = arith.constant 0.000000e+00 : f32
    %15 = vector.broadcast %cst_11 : f32 to vector<8x64xf32>
    %16 = arith.maximumf %14, %15 : vector<8x64xf32>
    %17 = arith.truncf %16 : vector<8x64xf32> to vector<8x64xbf16>
    %c0_12 = arith.constant 0 : index
    %c0_13 = arith.constant 0 : index
    %18 = vector.load %arg6[%c0_12, %c0_13] : memref<64x8xbf16, #tpu.memory_space<vmem>>, vector<64x8xbf16>
    %cst_14 = arith.constant dense<0.000000e+00> : vector<8x8xf32>
    %19 = tpu.matmul %17, %18, %cst_14 {dimension_numbers = #tpu.dot_dimension_numbers<[1], [0], [0], [1], [0, 0, 1, 1], [], []>} : vector<8x64xbf16>, vector<64x8xbf16>, vector<8x8xf32> -> vector<8x8xf32>
    %c0_15 = arith.constant 0 : index
    %c0_16 = arith.constant 0 : index
    %20 = vector.load %arg7[%c0_15, %c0_16] : memref<1x8xf32, #tpu.memory_space<vmem>>, vector<1x8xf32>
    %21 = vector.broadcast %20 : vector<1x8xf32> to vector<8x8xf32>
    %22 = arith.addf %19, %21 : vector<8x8xf32>
    %c0_17 = arith.constant 0 : index
    %c0_18 = arith.constant 0 : index
    %23 = vector.load %arg8[%c0_17, %c0_18] : memref<8x8xf32, #tpu.memory_space<vmem>>, vector<8x8xf32>
    tpu.vector_store %arg8[%c0_17, %c0_18], %22 {strides = array<i32>} : memref<8x8xf32, #tpu.memory_space<vmem>>, vector<8x8xf32>,
    return
  }
  func.func @transform_0(%arg0: i32) -> (i32, i32) {
    %c0_i32 = arith.constant 0 : i32
    %c0_i32_0 = arith.constant 0 : i32
    return %arg0, %c0_i32 : i32, i32
  }
  func.func @transform_1(%arg0: i32) -> (i32, i32) {
    %c0_i32 = arith.constant 0 : i32
    %c0_i32_0 = arith.constant 0 : i32
    %c0_i32_1 = arith.constant 0 : i32
    return %c0_i32, %c0_i32_0 : i32, i32
  }
  func.func @transform_2(%arg0: i32) -> (i32, i32) {
    %c0_i32 = arith.constant 0 : i32
    %c0_i32_0 = arith.constant 0 : i32
    %c0_i32_1 = arith.constant 0 : i32
    return %c0_i32, %c0_i32_0 : i32, i32
  }
  func.func @transform_3(%arg0: i32) -> (i32, i32) {
    %c0_i32 = arith.constant 0 : i32
    %c0_i32_0 = arith.constant 0 : i32
    %c0_i32_1 = arith.constant 0 : i32
    return %c0_i32, %c0_i32_0 : i32, i32
  }
  func.func @transform_4(%arg0: i32) -> (i32, i32) {
    %c0_i32 = arith.constant 0 : i32
    %c0_i32_0 = arith.constant 0 : i32
    %c0_i32_1 = arith.constant 0 : i32
    return %c0_i32, %c0_i32_0 : i32, i32
  }
  func.func @transform_5(%arg0: i32) -> (i32, i32) {
    %c0_i32 = arith.constant 0 : i32
    %c0_i32_0 = arith.constant 0 : i32
    %c0_i32_1 = arith.constant 0 : i32
    return %c0_i32, %c0_i32_0 : i32, i32
  }
  func.func @transform_6(%arg0: i32) -> (i32, i32) {
    %c0_i32 = arith.constant 0 : i32
    %c0_i32_0 = arith.constant 0 : i32
    %c0_i32_1 = arith.constant 0 : i32
    return %c0_i32, %c0_i32_0 : i32, i32
  }
  func.func @transform_7(%arg0: i32) -> (i32, i32) {
    %c0_i32 = arith.constant 0 : i32
    %c0_i32_0 = arith.constant 0 : i32
    return %arg0, %c0_i32 : i32, i32
  }
}

</mosaic_0001>

<bundles_post_ra>
// kernel: tpu_custom_call.1
= control target key start
LH: loop header
LB: loop body
LE: loop exit
PB: predicated region body
PF: predicated region fallthrough
CT: control target
= control target key end

     0   :  { %vm42_vm0 = vcmask 1043456   ;;  %v361_v2 = vmov 0.0   ;;  %vm362_vm1 = vmmov 0   ;;  %vm38_vm2 = vcmask 64512   ;;  %s459_s0 = inlined_call_operand.vmem [shape: f32[8,8], index: 0, kind: input, shape index: {}]   ;;  %s460_s1 = inlined_call_operand.vmem [shape: bf16[8,64], index: 1, kind: input, shape index: {}]   ;;  %s461_s2 = inlined_call_operand.vmem [shape: f32[1,64], index: 2, kind: input, shape index: {}]   ;;  %s462_s3 = inlined_call_operand.vmem [shape: bf16[64,64], index: 3, kind: input, shape index: {}]   ;;  %s463_s4 = inlined_call_operand.vmem [shape: f32[1,64], index: 4, kind: input, shape index: {}]   ;;  %s464_s5 = inlined_call_operand.vmem [shape: bf16[64,8], index: 5, kind: input, shape index: {}]   ;;  %s465_s6 = inlined_call_operand.vmem [shape: f32[1,8], index: 6, kind: input, shape index: {}]   ;;  %s466_s7 = inlined_call_operand.hbm [shape: f32[8,8], index: 7, kind: output, shape index: {}]  }
   0x1   :  { %v30_v0 = vld [vmem:[%s460_s1] sm:$0xf]  ;;  %296 = vmatprep.subr.bf16.mxu0 %v361_v2  ;;  %298 = vmatprep.mubr.msk.bf16.mxu0 %vm362_vm1, %v361_v2  ;;  %v330_v6 = vld [vmem:[%s462_s3 + $0x8] sm:$0xff]  }
   0x2   :  { %v28_v1 = vld [vmem:[%s459_s0] sm:$0xff]  ;;  %v44_v3 = vsel %vm42_vm0, %v30_v0, 0  ;;  %302 = vmatprep.subr.bf16.mxu1 %v361_v2  ;;  %310 = vmatprep.mubr.msk.bf16.mxu1 %vm362_vm1, %v361_v2 }
   0x3   :  { %v29_v4 = vpack.c.bf16 %v28_v1, %v28_v1  ;;  %297 = vmatpush3.bf16.msra.mxu0 %v44_v3  ;;  %v329_v5 = vld [vmem:[%s462_s3] sm:$0xff]  }
   0x4   :  { %314 = vmatprep.subr.bf16.mxu0 %v361_v2  ;;  %303 = vmatpush3.bf16.msra.mxu1 %v329_v5 }
   0x5   :  { %304 = vmatprep.subr.bf16.mxu1 %v361_v2 }
   0x6   :  { %299 = vmatmul.mubr.msk.bf16.vlgmr.msra.gmra.mrb[0].mxu0 %vm38_vm2, %v29_v4 }
   0x7   :  { %322 = vmatprep.mubr.msk.bf16.mxu0 %vm362_vm1, %v361_v2 }
   0x8   :  { %12 = vsyncpa [#allocation3], 0  ;;  %305 = vmatpush3.bf16.msra.mxu1 %v330_v6  ;;  %v331_v7 = vld [vmem:[%s462_s3 + $0x10] sm:$0xff]   ;;  %v332_v8 = vld [vmem:[%s462_s3 + $0x18] sm:$0xff]   ;;  %vm127_vm3 = vcmask 523264   ;;  %s363_s23 = smov [#allocation2]  }
   0x9   :  { %306 = vmatprep.subr.bf16.mxu1 %v361_v2  ;;  %v333_v9 = vld [vmem:[%s464_s5] sm:$0xff]   ;;  %v334_v10 = vld [vmem:[%s464_s5 + $0x8] sm:$0xff]   ;;  %v335_v19 = vld [vmem:[%s464_s5 + $0x10] sm:$0xff]  }
   0xa   :  { %315 = vmatpush3.bf16.msra.mxu0 %v333_v9  ;;  %v270_v11 = vld [vmem:[%s461_s2] ss:$0 sm:$0xff]  ;;  %v336_v20 = vld [vmem:[%s464_s5 + $0x18] sm:$0xff]   ;;  %s262_s5 = sshll.u32 %s363_s23, 4  ;;  %s263_s5 = int_to_ptr.vmem [resolvable:$true] %s262_s5 }
   0xb   :  { %316 = vmatprep.subr.bf16.mxu0 %v361_v2  ;;  %v272_v21 = vld [vmem:[%s463_s4] ss:$0 sm:$0xff]  ;;  %s337_s4 = scalar_lea.vmem %s263_s5, 128  ;;  %p342_p1 = scmp.lt.s32.totalorder %s263_s5, %s263_s5 }
   0xc   :  { %307 = vmatpush3.bf16.msra.mxu1 %v331_v7  ;;  %v278_v29 = vld [vmem:[%s465_s6] ss:$0 sm:$0xff]  ;;  %p338_p0 = scmp.ne.s32.totalorder %s263_s5, %s337_s4  ;;  %p343_p2 = scmp.lt.s32.totalorder %s337_s4, %s337_s4 }
   0xd   :  { %308 = vmatprep.subr.bf16.mxu1 %v361_v2 }
   0xe   :  { %317 = vmatpush3.bf16.msra.mxu0 %v334_v10  ;;  %p344_p3 = por %p343_p2, %p342_p1 }
   0xf   :  { %318 = vmatprep.subr.bf16.mxu0 %v361_v2 }
  0x10   :  { %309 = vmatpush3.bf16.msra.mxu1 %v332_v8  ;;  %p345_p4 = pnand %p344_p3, %p338_p0 }
  0x12   :  { %319 = vmatpush3.bf16.msra.mxu0 %v335_v19 }
  0x13   :  { %320 = vmatprep.subr.bf16.mxu0 %v361_v2 }
  0x16   :  { %321 = vmatpush3.bf16.msra.mxu0 %v336_v20 }
  0xd9   :  { %v80_v12 = vpop.f32.mrb[0].mxu0 }
  0xda   :  { %v81_v13 = vadd.f32 %v270_v11, %v80_v12  ;;  %v300_v14 = vpop.f32.mrb[1].mxu0 }
  0xdb   :  { %v83_v15 = vpop.f32.mrb[2].mxu0 }
  0xdc   :  { %v86_v16 = vmax.f32 %v81_v13, 0.0  ;;  %v301_v17 = vpop.f32.mrb[3].mxu0 }
  0xde   :  { %v87_v18 = vpack.c.bf16 %v86_v16, %v86_v16 }
  0xe0   :  { %311 = vmatmul.mubr.msk.bf16.vlgmr.msra.gmra.mrb[0].mxu1 %vm127_vm3, %v87_v18 }
 0x1b3   :  { %v165_v22 = vpop.f32.mrb[0].mxu1 }
 0x1b4   :  { %v166_v23 = vadd.f32 %v272_v21, %v165_v22  ;;  %v312_v24 = vpop.f32.mrb[1].mxu1 }
 0x1b5   :  { %v168_v25 = vpop.f32.mrb[2].mxu1 }
 0x1b6   :  { %v171_v26 = vmax.f32 %v166_v23, 0.0  ;;  %v313_v27 = vpop.f32.mrb[3].mxu1 }
 0x1b8   :  { %v172_v28 = vpack.c.bf16 %v171_v26, %v171_v26 }
 0x1ba   :  { %323 = vmatmul.mubr.msk.bf16.vlgmr.msra.gmra.mrb[4].mxu0 %vm127_vm3, %v172_v28 }
 0x28d   :  { %v249_v30 = vpop.f32.mrb[4].mxu0 }
 0x28e   :  { %v250_v31 = vadd.f32 %v278_v29, %v249_v30  ;;  %v324_v32 = vpop.f32.mrb[5].mxu0 }
 0x28f   :  { %v252_v33 = vpop.f32.mrb[6].mxu0 }
 0x290   :  { %255 = vst.msk [vmem:[#allocation2] sm:$0xff] %vm38_vm2, %v250_v31  ;;  %v325_v34 = vpop.f32.mrb[7].mxu0 }
 0x291   :  { %348 = shalt.err (!%p345_p4)
}
 0x292   :  { %s349_s6 = scalar_lea.hbm %s466_s7, 128 }
 0x293   :  { %p350_p5 = scmp.ne.s32.totalorder %s466_s7, %s349_s6  ;;  %p353_p6 = scmp.lt.u32.totalorder %s349_s6, %s466_s7 }
 0x295   :  { %p355_p7 = pnand %p353_p6, %p350_p5 }
 0x297   :  { %358 = shalt.err (!%p355_p7)
}
 0x298   :  { %265 = dma.vmem_to_hbm [thread:$0]  %s263_s5, 128, %s466_s7, [#allocation3]  }
 0x299   :  { %359 = dma.done.wait [#allocation3], 128  }
 0x29a   :  { %360 = vsyncadd [#allocation3], 4294967168 }
 0x29b   :  { %269 = vsyncpa [#allocation3], 1 }

</bundles_post_ra>
